<compile_context>
chip_gen: v5e
topology: v5e:2x2
jax: 0.10.0
libtpu: 0.0.40
codegen_flags: <defaults>
</compile_context>

<pallas_src>
from functools import partial

import jax
import jax.numpy as jnp
from jax.experimental import pallas as pl
from jax.experimental.pallas import tpu as pltpu

LANES = 128
MAX_TILE_ROWS = 8192          # (8192,128) f32 block = 4 MiB
ROW_ALIGN = 32                # satisfies f32 (8), bf16 (16) and int8/bool (32) sublane tiling
NEG_FILL = -1e9               # sigmoid(NEG_FILL) == 0, bce == 0 -> padded/masked elems add 0
VMEM_LIMIT_BYTES = 32 * 1024 * 1024   # explicit: > v5e's 16 MiB default, < v7x's 64 MiB phys


def _round_up(v, m):
    return (v + m - 1) // m * m


def _num_tensorcores():
    # v7x exposes 2 TensorCores per chip to one Pallas kernel; v5e/v6e have 1.
    try:
        kind = jax.devices()[0].device_kind.lower()
    except Exception:
        return 1
    return 2 if ("v7" in kind or "tpu7" in kind) else 1


def _focal_dice_kernel(x_ref, t_ref, o_ref, acc_ref, *, alpha, gamma, binary_targets,
                       tile_rows, valid_rows, need_mask, two_axes):
    if two_axes:
        step = pl.program_id(1)
        nsteps = pl.num_programs(1)
        blk = pl.program_id(0) * nsteps + step
    else:
        step = pl.program_id(0)
        nsteps = pl.num_programs(0)
        blk = step

    @pl.when(step == 0)
    def _():
        acc_ref[...] = jnp.zeros_like(acc_ref)

    x = x_ref[...].astype(jnp.float32)
    t = t_ref[...].astype(jnp.float32)

    if need_mask:
        # Ragged tail: rows >= valid_rows are Pallas boundary padding (or a revisited block
        # when this core's step range overshoots) -- neutralize before accumulation.
        rid = blk * tile_rows + jax.lax.broadcasted_iota(jnp.int32, x.shape, 0)
        valid = rid < valid_rows
        x = jnp.where(valid, x, NEG_FILL)
        t = jnp.where(valid, t, 0.0)

    if binary_targets:
        # Exact for 0/1 labels.  sigmoid via tanh = 1 EUP op (vs exp+recip), one log for bce.
        pos = t > 0.5
        s = jnp.where(pos, x, -x)
        pt = 0.5 * (1.0 + jnp.tanh(0.5 * s))           # = sigmoid(s) = prob of the true class
        bce = jnp.minimum(-jnp.log(pt), 100.0)         # torch clamps log at -100
        p = jnp.where(pos, pt, 1.0 - pt)               # = sigmoid(x)
    else:
        # General soft-target path, faithful to torch binary_cross_entropy semantics.
        p = jax.nn.sigmoid(x)
        log_p = jnp.maximum(jnp.log(p), -100.0)
        log_1mp = jnp.maximum(jnp.log(1.0 - p), -100.0)
        bce = -(t * log_p + (1.0 - t) * log_1mp)
        pt = jnp.exp(-bce)

    u = 1.0 - pt
    w = u * u if gamma == 2 else u ** gamma            # avoid float pow for gamma=2
    f = w * bce if alpha == 1.0 else alpha * (w * bce)

    # Full-vreg accumulation: reduce the leading axis with VPU adds across vregs into a
    # (4,8,128) accumulator.  tile_rows is always a multiple of 8 -> layout-preserving reshape.
    sub = x.shape[0] // 8
    acc_ref[0] += jnp.sum(f.reshape(sub, 8, LANES), axis=0)
    acc_ref[1] += jnp.sum((p * t).reshape(sub, 8, LANES), axis=0)
    acc_ref[2] += jnp.sum(p.reshape(sub, 8, LANES), axis=0)
    acc_ref[3] += jnp.sum(t.reshape(sub, 8, LANES), axis=0)

    @pl.when(step == nsteps - 1)
    def _():
        o_ref[0] = acc_ref[...]                        # per-core (4, 8, 128) partial sums


def focal_dice_loss_with_log(inputs, target, *, bce_weight=0.5, dice_weight=0.5,
                             alpha=1.0, gamma=2.0, smooth=1e-3, binary_targets=None):
    if binary_targets is None:
        # Integer / bool targets are guaranteed 0/1 -> fast path; float targets may be soft,
        # so they default to the torch-faithful general path (opt in with binary_targets=True).
        binary_targets = bool(jnp.issubdtype(target.dtype, jnp.integer)
                              or jnp.issubdtype(target.dtype, jnp.bool_))

    n_elems = inputs.size
    x = jnp.reshape(inputs, (-1,))
    t = jnp.reshape(target, (-1,))

    # Only the sub-128-element remainder is ever padded (NEG_FILL logits -> zero contribution).
    rows = pl.cdiv(n_elems, LANES)
    if rows * LANES != n_elems:
        pad = rows * LANES - n_elems
        x = jnp.pad(x, (0, pad), constant_values=NEG_FILL)
        t = jnp.pad(t, (0, pad), constant_values=0)

    num_cores = _num_tensorcores()

    if rows < ROW_ALIGN:
        # Tiny input: one block over everything; pad rows to a multiple of 8 (a few KiB copy).
        rows_p = _round_up(rows, 8)
        if rows_p != rows:
            extra = (rows_p - rows) * LANES
            x = jnp.pad(x, (0, extra), constant_values=NEG_FILL)
            t = jnp.pad(t, (0, extra), constant_values=0)
        rows_eff, cores, tile_rows, steps = rows_p, 1, rows_p, 1
    else:
        cores = num_cores if rows >= num_cores * ROW_ALIGN else 1
        per_core = pl.cdiv(rows, cores)
        tile_rows = min(MAX_TILE_ROWS,
                        _round_up(per_core, ROW_ALIGN),
                        (rows // ROW_ALIGN) * ROW_ALIGN)   # keep block <= array rows
        steps = pl.cdiv(per_core, tile_rows)
        rows_eff = rows

    x2 = jnp.reshape(x, (-1, LANES))
    t2 = jnp.reshape(t, (-1, LANES))
    need_mask = cores * steps * tile_rows != rows_eff
    nblocks = pl.cdiv(rows_eff, tile_rows)     # number of blocks touching real data
    two_axes = cores > 1

    if two_axes:
        grid = (cores, steps)
        # Clamp fully-overshooting steps onto the last real block; the in-kernel row mask
        # (row0 >= valid_rows) zeroes their contribution, so no OOB DMA is ever issued.
        in_idx = lambda c, i: (jnp.minimum(c * steps + i, nblocks - 1), 0)
        out_idx = lambda c, i: (c, 0, 0, 0)
        dims = (getattr(pltpu, "CORE_PARALLEL", "parallel"),
                getattr(pltpu, "ARBITRARY", "arbitrary"))
    else:
        grid = (steps,)
        in_idx = lambda i: (i, 0)
        out_idx = lambda i: (0, 0, 0, 0)
        dims = (getattr(pltpu, "ARBITRARY", "arbitrary"),)

    kernel = partial(_focal_dice_kernel, alpha=alpha, gamma=gamma,
                     binary_targets=binary_targets, tile_rows=tile_rows,
                     valid_rows=rows_eff, need_mask=need_mask, two_axes=two_axes)

    partials = pl.pallas_call(
        kernel,
        out_shape=jax.ShapeDtypeStruct((cores, 4, 8, LANES), jnp.float32),
        grid_spec=pltpu.PrefetchScalarGridSpec(
            num_scalar_prefetch=0,
            grid=grid,
            in_specs=[pl.BlockSpec((tile_rows, LANES), in_idx),
                      pl.BlockSpec((tile_rows, LANES), in_idx)],
            out_specs=pl.BlockSpec((1, 4, 8, LANES), out_idx),
            scratch_shapes=[pltpu.VMEM((4, 8, LANES), jnp.float32)],
        ),
        compiler_params=pltpu.CompilerParams(
            dimension_semantics=dims,
            vmem_limit_bytes=VMEM_LIMIT_BYTES),
    )(x2, t2)

    # Tiny JAX epilogue: combine per-core / per-lane partials into the scalar loss.
    sums = jnp.sum(partials, axis=(0, 2, 3))      # (4,): [sum_focal, inter, sum_p, sum_t]
    focal = sums[0] / float(n_elems)
    dice = (2.0 * sums[1] + smooth) / (sums[2] + sums[3] + smooth)
    return bce_weight * focal + dice_weight * (-jnp.log(dice))


def _reference(x, t):
    # Pure-JAX, torch-faithful forward pass (f32) for validation.
    t32 = t.astype(jnp.float32)
    p = jax.nn.sigmoid(x.astype(jnp.float32))
    bce = -(t32 * jnp.maximum(jnp.log(p), -100.0)
            + (1.0 - t32) * jnp.maximum(jnp.log(1.0 - p), -100.0))
    focal = jnp.mean((1.0 - jnp.exp(-bce)) ** 2 * bce)
    inter = jnp.sum(p * t32)
    dice = (2.0 * inter + 1e-3) / (jnp.sum(p) + jnp.sum(t32) + 1e-3)
    return 0.5 * focal + 0.5 * (-jnp.log(dice))


if __name__ == "__main__":
    key = jax.random.PRNGKey(0)
    k1, k2, k3, k4 = jax.random.split(key, 4)

    # NCHW logits + binary int8 targets (fast path, lane-aligned element count).
    x1 = jax.random.normal(k1, (2, 4, 16, 16), dtype=jnp.float32)
    t1 = (jax.random.uniform(k2, (2, 4, 16, 16)) > 0.5).astype(jnp.int8)
    loss1 = jax.block_until_ready(focal_dice_loss_with_log(x1, t1))
    ref1 = _reference(x1, t1)
    assert jnp.allclose(loss1, ref1, rtol=1e-4, atol=1e-4), (loss1, ref1)

    # Ragged size (not a multiple of 128 or of the tile rows) + bf16 targets via the
    # torch-faithful general path -> exercises tail padding and in-kernel row masking.
    x2 = jax.random.normal(k3, (3, 5, 17, 19), dtype=jnp.float32)
    t2 = (jax.random.uniform(k4, (3, 5, 17, 19)) > 0.5).astype(jnp.bfloat16)
    loss2 = jax.block_until_ready(focal_dice_loss_with_log(x2, t2))
    ref2 = _reference(x2, t2)
    assert jnp.allclose(loss2, ref2, rtol=1e-4, atol=1e-4), (loss2, ref2)

    print("KERNEL_OK")
</pallas_src>

<mosaic_0001>
module attributes {stable_mosaic.version = 11 : i64} {
  func.func @_focal_dice_kernel(%arg0: i32, %arg1: memref<16x128xf32, #tpu.memory_space<vmem>>, %arg2: memref<16x128xi8, #tpu.memory_space<vmem>>, %arg3: memref<1x4x8x128xf32, #tpu.memory_space<vmem>>, %arg4: memref<4x8x128xf32, #tpu.memory_space<vmem>>) attributes {dimension_semantics = [#tpu.dimension_semantics<arbitrary>], iteration_bounds = array<i64: 1>, scalar_prefetch = 0 : i64, scratch_operands = 1 : i64, tpu.core_type = #tpu.core_type<tc>, window_params = [{transform_indices = @transform_0, window_bounds = array<i64: 16, 128>}, {transform_indices = @transform_1, window_bounds = array<i64: 16, 128>}, {pipeline_mode = #tpu.pipeline_mode<synchronous>, transform_indices = @transform_2, window_bounds = array<i64: 1, 4, 8, 128>}]} {
    %c0_i32 = arith.constant 0 : i32
    %0 = arith.cmpi eq, %arg0, %c0_i32 : i32
    %1 = arith.extui %0 : i1 to i32
    %c0_i32_0 = arith.constant 0 : i32
    %2 = arith.cmpi ne, %1, %c0_i32_0 : i32
    scf.if %2 {
      %cst_39 = arith.constant 0.000000e+00 : f32
      %66 = vector.broadcast %cst_39 : f32 to vector<4x8x128xf32>
      %c0_40 = arith.constant 0 : index
      %c0_41 = arith.constant 0 : index
      %c0_42 = arith.constant 0 : index
      %67 = vector.load %arg4[%c0_40, %c0_41, %c0_42] : memref<4x8x128xf32, #tpu.memory_space<vmem>>, vector<4x8x128xf32>
      tpu.vector_store %arg4[%c0_40, %c0_41, %c0_42], %66 {strides = array<i32>} : memref<4x8x128xf32, #tpu.memory_space<vmem>>, vector<4x8x128xf32>,
    } else {
    }
    %c0 = arith.constant 0 : index
    %c0_1 = arith.constant 0 : index
    %3 = vector.load %arg1[%c0, %c0_1] : memref<16x128xf32, #tpu.memory_space<vmem>>, vector<16x128xf32>
    %c0_2 = arith.constant 0 : index
    %c0_3 = arith.constant 0 : index
    %4 = vector.load %arg2[%c0_2, %c0_3] : memref<16x128xi8, #tpu.memory_space<vmem>>, vector<16x128xi8>
    %5 = arith.sitofp %4 : vector<16x128xi8> to vector<16x128xf32>
    %cst = arith.constant 5.000000e-01 : f32
    %6 = vector.broadcast %cst : f32 to vector<16x128xf32>
    %7 = arith.cmpf ogt, %5, %6 : vector<16x128xf32>
    %cst_4 = arith.constant 0.000000e+00 : f32
    %8 = vector.broadcast %cst_4 : f32 to vector<16x128xf32>
    %9 = arith.subf %8, %3 : vector<16x128xf32>
    %10 = arith.select %7, %3, %9 : vector<16x128xi1>, vector<16x128xf32>
    %cst_5 = arith.constant 5.000000e-01 : f32
    %11 = vector.broadcast %cst_5 : f32 to vector<16x128xf32>
    %12 = arith.mulf %11, %10 : vector<16x128xf32>
    %13 = math.tanh %12 : vector<16x128xf32>
    %cst_6 = arith.constant 1.000000e+00 : f32
    %14 = vector.broadcast %cst_6 : f32 to vector<16x128xf32>
    %15 = arith.addf %14, %13 : vector<16x128xf32>
    %cst_7 = arith.constant 5.000000e-01 : f32
    %16 = vector.broadcast %cst_7 : f32 to vector<16x128xf32>
    %17 = arith.mulf %16, %15 : vector<16x128xf32>
    %18 = math.log %17 : vector<16x128xf32>
    %cst_8 = arith.constant 0.000000e+00 : f32
    %19 = vector.broadcast %cst_8 : f32 to vector<16x128xf32>
    %20 = arith.subf %19, %18 : vector<16x128xf32>
    %cst_9 = arith.constant 1.000000e+02 : f32
    %21 = vector.broadcast %cst_9 : f32 to vector<16x128xf32>
    %22 = arith.minimumf %20, %21 : vector<16x128xf32>
    %cst_10 = arith.constant 1.000000e+00 : f32
    %23 = vector.broadcast %cst_10 : f32 to vector<16x128xf32>
    %24 = arith.subf %23, %17 : vector<16x128xf32>
    %25 = arith.select %7, %17, %24 : vector<16x128xi1>, vector<16x128xf32>
    %cst_11 = arith.constant 1.000000e+00 : f32
    %26 = vector.broadcast %cst_11 : f32 to vector<16x128xf32>
    %27 = arith.subf %26, %17 : vector<16x128xf32>
    %28 = arith.mulf %27, %27 : vector<16x128xf32>
    %29 = arith.mulf %28, %22 : vector<16x128xf32>
    %c0_12 = arith.constant 0 : index
    %c0_13 = arith.constant 0 : index
    %c0_14 = arith.constant 0 : index
    %30 = vector.load %arg4[%c0_12, %c0_13, %c0_14] : memref<4x8x128xf32, #tpu.memory_space<vmem>>, vector<1x8x128xf32>
    %31 = vector.shape_cast %30 : vector<1x8x128xf32> to vector<8x128xf32>
    %32 = vector.shape_cast %29 : vector<16x128xf32> to vector<2x8x128xf32>
    %cst_15 = arith.constant dense<0.000000e+00> : vector<8x128xf32>
    %33 = vector.multi_reduction <add>, %32, %cst_15 [0] : vector<2x8x128xf32> to vector<8x128xf32>
    %34 = arith.addf %31, %33 : vector<8x128xf32>
    %c0_16 = arith.constant 0 : index
    %c0_17 = arith.constant 0 : index
    %c0_18 = arith.constant 0 : index
    %35 = vector.load %arg4[%c0_16, %c0_17, %c0_18] : memref<4x8x128xf32, #tpu.memory_space<vmem>>, vector<1x8x128xf32>
    %36 = vector.shape_cast %35 : vector<1x8x128xf32> to vector<8x128xf32>
    %37 = vector.shape_cast %34 : vector<8x128xf32> to vector<1x8x128xf32>
    tpu.vector_store %arg4[%c0_16, %c0_17, %c0_18], %37 {strides = array<i32>} : memref<4x8x128xf32, #tpu.memory_space<vmem>>, vector<1x8x128xf32>,
    %c1 = arith.constant 1 : index
    %c0_19 = arith.constant 0 : index
    %c0_20 = arith.constant 0 : index
    %38 = vector.load %arg4[%c1, %c0_19, %c0_20] : memref<4x8x128xf32, #tpu.memory_space<vmem>>, vector<1x8x128xf32>
    %39 = vector.shape_cast %38 : vector<1x8x128xf32> to vector<8x128xf32>
    %40 = arith.mulf %25, %5 : vector<16x128xf32>
    %41 = vector.shape_cast %40 : vector<16x128xf32> to vector<2x8x128xf32>
    %cst_21 = arith.constant dense<0.000000e+00> : vector<8x128xf32>
    %42 = vector.multi_reduction <add>, %41, %cst_21 [0] : vector<2x8x128xf32> to vector<8x128xf32>
    %43 = arith.addf %39, %42 : vector<8x128xf32>
    %c1_22 = arith.constant 1 : index
    %c0_23 = arith.constant 0 : index
    %c0_24 = arith.constant 0 : index
    %44 = vector.load %arg4[%c1_22, %c0_23, %c0_24] : memref<4x8x128xf32, #tpu.memory_space<vmem>>, vector<1x8x128xf32>
    %45 = vector.shape_cast %44 : vector<1x8x128xf32> to vector<8x128xf32>
    %46 = vector.shape_cast %43 : vector<8x128xf32> to vector<1x8x128xf32>
    tpu.vector_store %arg4[%c1_22, %c0_23, %c0_24], %46 {strides = array<i32>} : memref<4x8x128xf32, #tpu.memory_space<vmem>>, vector<1x8x128xf32>,
    %c2 = arith.constant 2 : index
    %c0_25 = arith.constant 0 : index
    %c0_26 = arith.constant 0 : index
    %47 = vector.load %arg4[%c2, %c0_25, %c0_26] : memref<4x8x128xf32, #tpu.memory_space<vmem>>, vector<1x8x128xf32>
    %48 = vector.shape_cast %47 : vector<1x8x128xf32> to vector<8x128xf32>
    %49 = vector.shape_cast %25 : vector<16x128xf32> to vector<2x8x128xf32>
    %cst_27 = arith.constant dense<0.000000e+00> : vector<8x128xf32>
    %50 = vector.multi_reduction <add>, %49, %cst_27 [0] : vector<2x8x128xf32> to vector<8x128xf32>
    %51 = arith.addf %48, %50 : vector<8x128xf32>
    %c2_28 = arith.constant 2 : index
    %c0_29 = arith.constant 0 : index
    %c0_30 = arith.constant 0 : index
    %52 = vector.load %arg4[%c2_28, %c0_29, %c0_30] : memref<4x8x128xf32, #tpu.memory_space<vmem>>, vector<1x8x128xf32>
    %53 = vector.shape_cast %52 : vector<1x8x128xf32> to vector<8x128xf32>
    %54 = vector.shape_cast %51 : vector<8x128xf32> to vector<1x8x128xf32>
    tpu.vector_store %arg4[%c2_28, %c0_29, %c0_30], %54 {strides = array<i32>} : memref<4x8x128xf32, #tpu.memory_space<vmem>>, vector<1x8x128xf32>,
    %c3 = arith.constant 3 : index
    %c0_31 = arith.constant 0 : index
    %c0_32 = arith.constant 0 : index
    %55 = vector.load %arg4[%c3, %c0_31, %c0_32] : memref<4x8x128xf32, #tpu.memory_space<vmem>>, vector<1x8x128xf32>
    %56 = vector.shape_cast %55 : vector<1x8x128xf32> to vector<8x128xf32>
    %57 = vector.shape_cast %5 : vector<16x128xf32> to vector<2x8x128xf32>
    %cst_33 = arith.constant dense<0.000000e+00> : vector<8x128xf32>
    %58 = vector.multi_reduction <add>, %57, %cst_33 [0] : vector<2x8x128xf32> to vector<8x128xf32>
    %59 = arith.addf %56, %58 : vector<8x128xf32>
    %c3_34 = arith.constant 3 : index
    %c0_35 = arith.constant 0 : index
    %c0_36 = arith.constant 0 : index
    %60 = vector.load %arg4[%c3_34, %c0_35, %c0_36] : memref<4x8x128xf32, #tpu.memory_space<vmem>>, vector<1x8x128xf32>
    %61 = vector.shape_cast %60 : vector<1x8x128xf32> to vector<8x128xf32>
    %62 = vector.shape_cast %59 : vector<8x128xf32> to vector<1x8x128xf32>
    tpu.vector_store %arg4[%c3_34, %c0_35, %c0_36], %62 {strides = array<i32>} : memref<4x8x128xf32, #tpu.memory_space<vmem>>, vector<1x8x128xf32>,
    %c0_i32_37 = arith.constant 0 : i32
    %63 = arith.cmpi eq, %arg0, %c0_i32_37 : i32
    %64 = arith.extui %63 : i1 to i32
    %c0_i32_38 = arith.constant 0 : i32
    %65 = arith.cmpi ne, %64, %c0_i32_38 : i32
    scf.if %65 {
      %c0_39 = arith.constant 0 : index
      %c0_40 = arith.constant 0 : index
      %c0_41 = arith.constant 0 : index
      %66 = vector.load %arg4[%c0_39, %c0_40, %c0_41] : memref<4x8x128xf32, #tpu.memory_space<vmem>>, vector<4x8x128xf32>
      %c0_42 = arith.constant 0 : index
      %c0_43 = arith.constant 0 : index
      %c0_44 = arith.constant 0 : index
      %c0_45 = arith.constant 0 : index
      %67 = vector.load %arg3[%c0_42, %c0_43, %c0_44, %c0_45] : memref<1x4x8x128xf32, #tpu.memory_space<vmem>>, vector<1x4x8x128xf32>
      %68 = vector.shape_cast %67 : vector<1x4x8x128xf32> to vector<4x8x128xf32>
      %69 = vector.shape_cast %66 : vector<4x8x128xf32> to vector<1x4x8x128xf32>
      tpu.vector_store %arg3[%c0_42, %c0_43, %c0_44, %c0_45], %69 {strides = array<i32>} : memref<1x4x8x128xf32, #tpu.memory_space<vmem>>, vector<1x4x8x128xf32>,
    } else {
    }
    return
  }
  func.func @transform_0(%arg0: i32) -> (i32, i32) {
    %c0_i32 = arith.constant 0 : i32
    %c0_i32_0 = arith.constant 0 : i32
    return %arg0, %c0_i32 : i32, i32
  }
  func.func @transform_1(%arg0: i32) -> (i32, i32) {
    %c0_i32 = arith.constant 0 : i32
    %c0_i32_0 = arith.constant 0 : i32
    return %arg0, %c0_i32 : i32, i32
  }
  func.func @transform_2(%arg0: i32) -> (i32, i32, i32, i32) {
    %c0_i32 = arith.constant 0 : i32
    %c0_i32_0 = arith.constant 0 : i32
    %c0_i32_1 = arith.constant 0 : i32
    %c0_i32_2 = arith.constant 0 : i32
    %c0_i32_3 = arith.constant 0 : i32
    return %c0_i32, %c0_i32_0, %c0_i32_1, %c0_i32_2 : i32, i32, i32, i32
  }
}

</mosaic_0001>

<bundles_post_ra>
// kernel: tpu_custom_call.1
= control target key start
LH: loop header
LB: loop body
LE: loop exit
PB: predicated region body
PF: predicated region fallthrough
CT: control target
= control target key end

     0   :  { %7 = vsyncpa [#allocation4], 0  ;;  %s280_s0 = inlined_call_operand.hbm [shape: f32[16,128], index: 0, kind: input, shape index: {}]   ;;  %s281_s1 = inlined_call_operand.hbm [shape: s8[16,128], index: 1, kind: input, shape index: {}]   ;;  %s282_s2 = inlined_call_operand.hbm [shape: f32[1,4,8,128], index: 2, kind: output, shape index: {}]  }
   0x1   :  { %8 = vsyncpa [#allocation7], 0 }
   0x2   :  { %9 = vsyncpa [#allocation5], 0  ;;  %s14_s11 = sshll.u32 %s280_s0, 4  ;;  %s239_s12 = smov [#allocation3]   ;;  %s15_s11 = int_to_ptr.hbm [resolvable:$true] %s14_s11 }
   0x3   :  { %s16_s13 = sshll.u32 %s239_s12, 4  ;;  %s27_s16 = sshll.u32 %s281_s1, 4  ;;  %s17_s13 = int_to_ptr.vmem [resolvable:$true] %s16_s13  ;;  %s28_s16 = int_to_ptr.hbm [resolvable:$true] %s27_s16 }
   0x4   :  { %s240_s17 = smov 128   ;;  %s241_s18 = smov 8  }
   0x5   :  { %22 = dma.hbm_to_vmem [thread:$0]  %s15_s11, 256, %s17_s13, [#allocation4], %s240_s17, %s240_s17, %s241_s18  }
   0x6   :  { %s242_s19 = smov [#allocation6]   ;;  %s243_s21 = smov 32  }
   0x7   :  { %s29_s20 = sshll.u32 %s242_s19, 4  ;;  %s244_s0 = smov 2   ;;  %s30_s20 = int_to_ptr.vmem [resolvable:$true] %s29_s20 }
   0x8   :  { %35 = dma.hbm_to_vmem [thread:$0]  %s28_s16, 64, %s30_s20, [#allocation7], %s243_s21, %s243_s21, %s244_s0  }
   0x9   :  { %233 = dma.done.wait [#allocation4], 256  }
   0xa   :  { %234 = vsyncadd [#allocation4], 4294967040 }
   0xb   :  { %235 = dma.done.wait [#allocation7], 64  }
   0xc   :  { %236 = vsyncadd [#allocation7], 4294967232  ;;  %v52_v0 = vld [vmem:[#allocation3] sm:$0xff]  ;;  %v53_v1 = vld [vmem:[#allocation3 + $0x8] sm:$0xff]  ;;  %s245_s1 = smov [#allocation8]   ;;  %s128_s25 = sshll.u32 %s282_s2, 4  ;;  %s129_s25 = int_to_ptr.hbm [resolvable:$true] %s128_s25 }
   0xd   :  { %v143_v2 = vld [vmem:[#allocation6] sm:$0xf]   ;;  %v62_v5 = vsub.f32 0.0, %v52_v0  ;;  %v63_v6 = vsub.f32 0.0, %v53_v1  ;;  %s126_s22 = sshll.u32 %s245_s1, 4  ;;  %s127_s22 = int_to_ptr.vmem [resolvable:$true] %s126_s22 }
   0xe   :  { %v144_v3 = vunpack.c.0.s8 %v143_v2  ;;  %v145_v4 = vunpack.c.1.s8 %v143_v2 }
  0x10   :  { %v58_v7 = vcvt.s32.f32 %v144_v3  ;;  %v59_v8 = vcvt.s32.f32 %v145_v4 }
  0x12   :  { %vm60_vm0 = vcmp.gt.f32.partialorder %v58_v7, 0.5  ;;  %vm61_vm1 = vcmp.gt.f32.partialorder %v59_v8, 0.5  ;;  %v108_v9 = vadd.f32 %v59_v8, %v58_v7 }
  0x13   :  { %v64_v10 = vsel %vm60_vm0, %v52_v0, %v62_v5  ;;  %v65_v11 = vsel %vm61_vm1, %v53_v1, %v63_v6 }
  0x14   :  { %v66_v12 = vmul.f32 0.5, %v64_v10  ;;  %v67_v13 = vmul.f32 0.5, %v65_v11  ;;  %121 = vst [vmem:[#allocation8 + $0x18] sm:$0xff] %v108_v9 }
  0x16   :  { %153 = vtanh.f32 %v66_v12 }
  0x17   :  { %155 = vtanh.f32 %v67_v13 }
  0x1c   :  { %v154_v14 = vpop.eup %153 }
  0x1d   :  { %v156_v15 = vpop.eup %155  ;;  %v70_v16 = vadd.f32 1.0, %v154_v14 }
  0x1e   :  { %v71_v17 = vadd.f32 1.0, %v156_v15 }
  0x1f   :  { %v72_v18 = vmul.f32 0.5, %v70_v16 }
  0x20   :  { %v73_v19 = vmul.f32 0.5, %v71_v17 }
  0x21   :  { %157 = vlog2.f32 %v72_v18  ;;  %v82_v20 = vsub.f32 1.0, %v72_v18 }
  0x22   :  { %159 = vlog2.f32 %v73_v19  ;;  %v83_v21 = vsub.f32 1.0, %v73_v19 }
  0x23   :  { %v84_v22 = vsel %vm60_vm0, %v72_v18, %v82_v20  ;;  %v86_v33 = vmul.f32 %v82_v20, %v82_v20 }
  0x24   :  { %v85_v23 = vsel %vm61_vm1, %v73_v19, %v83_v21  ;;  %v96_v24 = vmul.f32 %v84_v22, %v58_v7  ;;  %v87_v35 = vmul.f32 %v83_v21, %v83_v21 }
  0x25   :  { %v97_v25 = vmul.f32 %v85_v23, %v59_v8  ;;  %v103_v26 = vadd.f32 %v85_v23, %v84_v22 }
  0x27   :  { %v158_v27 = vpop.eup %157  ;;  %v98_v28 = vadd.f32 %v97_v25, %v96_v24  ;;  %120 = vst [vmem:[#allocation8 + $0x10] sm:$0xff] %v103_v26 }
  0x28   :  { %v160_v29 = vpop.eup %159  ;;  %v75_v30 = vmul.f32 0.6931472, %v158_v27 }
  0x29   :  { %v77_v31 = vmul.f32 0.6931472, %v160_v29  ;;  %119 = vst [vmem:[#allocation8 + $0x8] sm:$0xff] %v98_v28 }
  0x2a   :  { %v78_v32 = vsub.f32 0.0, %v75_v30 }
  0x2b   :  { %v79_v34 = vsub.f32 0.0, %v77_v31 }
  0x2c   :  { %v80_v36 = vmin.f32 %v78_v32, 100.0 }
  0x2d   :  { %v81_v37 = vmin.f32 %v79_v34, 100.0 }
  0x2e   :  { %v88_v38 = vmul.f32 %v86_v33, %v80_v36 }
  0x2f   :  { %v89_v39 = vmul.f32 %v87_v35, %v81_v37 }
  0x31   :  { %v91_v40 = vadd.f32 %v89_v39, %v88_v38 }
  0x33   :  { %118 = vst [vmem:[#allocation8] sm:$0xff] %v91_v40 }
  0x34   :  { %134 = dma.vmem_to_hbm [thread:$0]  %s127_s22, 512, %s129_s25, [#allocation5], %s240_s17, %s240_s17, %s241_s18  }
  0x35   :  { %237 = dma.done.wait [#allocation5], 512  }
  0x36   :  { %238 = vsyncadd [#allocation5], 4294966784 }
  0x37   :  { %139 = vsyncpa [#allocation4], 1 }
  0x38   :  { %140 = vsyncpa [#allocation7], 1 }
  0x39   :  { %141 = vsyncpa [#allocation5], 1 }

</bundles_post_ra>
